<compile_context>
chip_gen: v6e
topology: v6e:2x2x1
jax: 0.10.0
libtpu: 0.0.40
codegen_flags: <defaults>
</compile_context>

<pallas_src>
import functools
import math

import jax
import jax.numpy as jnp
from jax import lax
from jax.experimental import pallas as pl
from jax.experimental.pallas import tpu as pltpu


def _round_up(n, m):
    return -(-n // m) * m


def _num_tensorcores():
    """Best-effort TensorCore count per chip, for grid-step targeting."""
    try:
        kind = jax.devices()[0].device_kind.lower()
    except Exception:
        return 1
    # v4 / v5p megacore and v7x have 2 TCs; v5e / v6e have 1.
    return 2 if any(tag in kind for tag in ("v4", "v5p", "v7")) else 1


def _choose_rows(num_rows, per_row_bytes, hbm_per_row_bytes, sub, fixed_bytes):
    """Rows of the flattened row view processed per grid step."""
    # Working-set target: fits v5e's 16 MiB default scoped VMEM with headroom
    # (v6e: 32 MiB scoped; v7x: 32 MiB scoped / 64 MiB physical).
    budget = 12 * 1024 * 1024
    rows_budget = max(sub, (budget - fixed_bytes) // max(per_row_bytes, 1))
    # 1-TC chips: ~2 steps is enough to pipeline; 2-TC chips: ~4 steps
    # (2 cores x double buffering).  Never shrink a step below ~2 MiB of HBM
    # traffic -- per-step overhead is ~0.35 us.
    target_steps = 2 * _num_tensorcores()
    rows_steps = max(sub, -(-num_rows // target_steps))
    rows_min_dma = max(sub, (2 * 1024 * 1024) // max(hbm_per_row_bytes, 1))
    rows = min(rows_budget, max(rows_steps, rows_min_dma))
    rows = max(sub, (rows // sub) * sub)
    return num_rows if rows >= num_rows else rows


def _grouped_kernel(x_ref, dup_ref, o_ref, *, compute_dtype, precision):
    # x_ref:   (rows, L)    L = k*W lanes = k consecutive h-rows
    # dup_ref: (L, 4L)      block-diagonal 0/1: column + row duplication
    # o_ref:   (rows, 4L)   the 2x2-upsampled output, in NCHW memory order
    x = x_ref[...]
    if x.dtype != compute_dtype:
        x = x.astype(compute_dtype)
    y = jnp.dot(x, dup_ref[...], precision=precision,
                preferred_element_type=jnp.float32)
    o_ref[...] = y.astype(o_ref.dtype)           # one dense, 128-aligned store


def _coldup_kernel(x_ref, dup_ref, o_ref, *, W, K, compute_dtype, precision,
                   two_store):
    # x_ref:   (rows, W)
    # dup_ref: (K, 2K)      column-duplication only (K = lane chunk, K | W)
    # o_ref:   (rows, 4W)   [repeat(x,2), repeat(x,2)] per input row
    w2 = 2 * W
    for c in range(W // K):                       # static unroll over lane chunks
        x = x_ref[:, c * K:(c + 1) * K]
        if x.dtype != compute_dtype:
            x = x.astype(compute_dtype)
        y = jnp.dot(x, dup_ref[...], precision=precision,
                    preferred_element_type=jnp.float32).astype(o_ref.dtype)
        if two_store:
            # Both slabs start at multiples of 128 lanes (guaranteed by wrapper).
            o_ref[:, 2 * c * K:2 * (c + 1) * K] = y
            o_ref[:, w2 + 2 * c * K:w2 + 2 * (c + 1) * K] = y
        else:
            # Unaligned half-width stores would be masked -> do one dense
            # full-width store instead (wrapper forces K == W here).
            o_ref[:, 4 * c * K:4 * (c + 1) * K] = jnp.concatenate([y, y], axis=-1)


@jax.jit
def upsample_nearest_2x(x_nchw):
    """Exact equivalent of F.interpolate(x, scale_factor=2) for 4-D NCHW input."""
    N, C, H, W = x_nchw.shape
    R = N * C * H                                 # flattened (n, c, h) rows
    dtype = x_nchw.dtype
    isz = jnp.dtype(dtype).itemsize
    sub = 8 * max(1, 4 // isz)                    # sublane multiple for dtype

    # MXU operand dtype / precision: exact copy semantics for one 1.0*x term.
    if dtype == jnp.bfloat16:
        compute_dtype, precision = jnp.bfloat16, None          # native, 1 pass
    else:
        compute_dtype, precision = jnp.float32, lax.Precision.HIGHEST
    cisz = jnp.dtype(compute_dtype).itemsize

    LCAP = 256                                    # contraction / dup-size cap

    # ---------------- layout mode selection ----------------
    k = 1
    if W % 32 != 0:
        kk = 32 // math.gcd(W, 32)               # smallest k with (k*W) % 32 == 0
        if kk * W <= LCAP and R % kk == 0:
            k = kk                               # packed ("grouped") mode

    if k > 1:
        # Grouped mode: k consecutive h-rows per block row; output lane width
        # 4L is a multiple of 128.  dup[p, q] = 1 iff output lane q sources
        # input lane p:  q//(4W) == p//W  (same h-row)  and
        # (q mod 2W)//2 == p mod W  (same column).
        L = k * W
        num_rows = R // k
        p = jnp.arange(L)[:, None]
        q = jnp.arange(4 * L)[None, :]
        dup = ((q // (4 * W) == p // W)
               & ((q % (2 * W)) // 2 == p % W)).astype(compute_dtype)

        per_row = (2 * _round_up(L, 128) * isz            # input block, 2 buffers
                   + 2 * _round_up(4 * L, 128) * isz      # output block, 2 buffers
                   + _round_up(4 * L, 128) * 4            # f32 dot result
                   + (_round_up(L, 128) * 4 if compute_dtype != dtype else 0))
        fixed = 2 * L * 4 * L * cisz + (1 << 20)          # dup (2 bufs) + slack
        rows = _choose_rows(num_rows, per_row, 5 * L * isz, sub, fixed)

        kernel = functools.partial(_grouped_kernel, compute_dtype=compute_dtype,
                                   precision=precision)
        in_specs = [pl.BlockSpec((rows, L), lambda i: (i, 0)),
                    pl.BlockSpec((L, 4 * L), lambda i: (0, 0))]
        out_spec = pl.BlockSpec((rows, 4 * L), lambda i: (i, 0))
        out_shape = jax.ShapeDtypeStruct((num_rows, 4 * L), dtype)
        x_rows = x_nchw.reshape(num_rows, L)
    else:
        # Column-dup mode: y = repeat(x, 2) along lanes; the two upsampled
        # rows are the two halves of the 4W-wide output row.
        two_store = (2 * W) % 128 == 0            # both half-slab stores aligned
        K = W
        if two_store and W > LCAP:                # cap contraction for large W
            for cand in (256, 128, 64):
                if W % cand == 0:
                    K = cand
                    break
        num_rows = R
        dup = (jnp.arange(2 * K)[None, :] // 2
               == jnp.arange(K)[:, None]).astype(compute_dtype)

        per_row = (2 * _round_up(W, 128) * isz
                   + 2 * _round_up(4 * W, 128) * isz
                   + _round_up(4 * W, 128) * 4
                   + (_round_up(W, 128) * 4 if compute_dtype != dtype else 0))
        fixed = 2 * K * 2 * K * cisz + (1 << 20)
        rows = _choose_rows(num_rows, per_row, 5 * W * isz, sub, fixed)

        kernel = functools.partial(_coldup_kernel, W=W, K=K,
                                   compute_dtype=compute_dtype,
                                   precision=precision, two_store=two_store)
        in_specs = [pl.BlockSpec((rows, W), lambda i: (i, 0)),
                    pl.BlockSpec((K, 2 * K), lambda i: (0, 0))]
        out_spec = pl.BlockSpec((rows, 4 * W), lambda i: (i, 0))
        out_shape = jax.ShapeDtypeStruct((num_rows, 4 * W), dtype)
        x_rows = x_nchw.reshape(num_rows, W)

    grid = (pl.cdiv(num_rows, rows),)
    # Explicit scoped-VMEM limit from the real working set (with 2x margin),
    # clamped so it is valid on every generation (<= 32 MiB).
    vmem_limit = int(min(max(16 << 20, 2 * (rows * per_row + fixed)), 32 << 20))

    out_rows = pl.pallas_call(
        kernel,
        out_shape=out_shape,
        grid=grid,
        in_specs=in_specs,
        out_specs=out_spec,
        compiler_params=pltpu.CompilerParams(
            dimension_semantics=("parallel",),    # shards across TCs on v7x
            vmem_limit_bytes=vmem_limit,
        ),
    )(x_rows, dup)

    # (rows, lanes) row-major is exactly the contiguous (N, C, 2H, 2W) layout.
    return out_rows.reshape(N, C, 2 * H, 2 * W)


class UpSampleLayer:
    """JAX/Pallas port of the PyTorch UpSampleLayer."""

    def __init__(self, in_channels, key):
        # Matches nn.Parameter(torch.randn(in_channels)) -- deterministic init.
        # It is not used by forward(), exactly as in the PyTorch module.
        self.input = jax.random.normal(key, (in_channels,), dtype=jnp.float32)

    def __call__(self, x):
        return upsample_nearest_2x(x)


if __name__ == "__main__":
    key = jax.random.PRNGKey(0)
    k_param, k_x = jax.random.split(key)

    # Spec-sized input (packed / grouped path: W=16 -> pack k=2 rows, L=32).
    N, C, H, W = 2, 4, 16, 16
    x = jax.random.normal(k_x, (N, C, H, W), dtype=jnp.float32)

    layer = UpSampleLayer(in_channels=C, key=k_param)
    out = jax.block_until_ready(layer(x))

    ref = jnp.repeat(jnp.repeat(x, 2, axis=2), 2, axis=3)
    assert out.shape == (N, C, 2 * H, 2 * W), out.shape
    assert out.dtype == x.dtype
    assert bool(jnp.allclose(out, ref)), "mismatch vs nearest-neighbor reference"

    # Also exercise the column-dup (W % 32 == 0, aligned two-store) path.
    x2 = jax.random.normal(jax.random.PRNGKey(1), (1, 2, 8, 64), dtype=jnp.float32)
    out2 = jax.block_until_ready(upsample_nearest_2x(x2))
    ref2 = jnp.repeat(jnp.repeat(x2, 2, axis=2), 2, axis=3)
    assert bool(jnp.allclose(out2, ref2)), "mismatch on column-dup path"

    print("KERNEL_OK")
</pallas_src>

<mosaic_0001>
module attributes {stable_mosaic.version = 11 : i64} {
  func.func @_grouped_kernel(%arg0: i32, %arg1: memref<64x32xf32, #tpu.memory_space<vmem>>, %arg2: memref<32x128xf32, #tpu.memory_space<vmem>>, %arg3: memref<64x128xf32, #tpu.memory_space<vmem>>) attributes {dimension_semantics = [#tpu.dimension_semantics<parallel>], iteration_bounds = array<i64: 1>, scalar_prefetch = 0 : i64, scratch_operands = 0 : i64, tpu.core_type = #tpu.core_type<tc>, window_params = [{transform_indices = @transform_0, window_bounds = array<i64: 64, 32>}, {pipeline_mode = #tpu.pipeline_mode<synchronous>, transform_indices = @transform_1, window_bounds = array<i64: 32, 128>}, {transform_indices = @transform_2, window_bounds = array<i64: 64, 128>}]} {
    %c0 = arith.constant 0 : index
    %c0_0 = arith.constant 0 : index
    %0 = vector.load %arg1[%c0, %c0_0] : memref<64x32xf32, #tpu.memory_space<vmem>>, vector<64x32xf32>
    %c0_1 = arith.constant 0 : index
    %c0_2 = arith.constant 0 : index
    %1 = vector.load %arg2[%c0_1, %c0_2] : memref<32x128xf32, #tpu.memory_space<vmem>>, vector<32x128xf32>
    %cst = arith.constant dense<0.000000e+00> : vector<64x128xf32>
    %2 = tpu.matmul %0, %1, %cst {dimension_numbers = #tpu.dot_dimension_numbers<[1], [0], [0], [1], [0, 0, 1, 1], [], []>, precision = #tpu.contract_precision<fp32>} : vector<64x32xf32>, vector<32x128xf32>, vector<64x128xf32> -> vector<64x128xf32>
    %c0_3 = arith.constant 0 : index
    %c0_4 = arith.constant 0 : index
    %3 = vector.load %arg3[%c0_3, %c0_4] : memref<64x128xf32, #tpu.memory_space<vmem>>, vector<64x128xf32>
    tpu.vector_store %arg3[%c0_3, %c0_4], %2 {strides = array<i32>} : memref<64x128xf32, #tpu.memory_space<vmem>>, vector<64x128xf32>,
    return
  }
  func.func @transform_0(%arg0: i32) -> (i32, i32) {
    %c0_i32 = arith.constant 0 : i32
    %c0_i32_0 = arith.constant 0 : i32
    return %arg0, %c0_i32 : i32, i32
  }
  func.func @transform_1(%arg0: i32) -> (i32, i32) {
    %c0_i32 = arith.constant 0 : i32
    %c0_i32_0 = arith.constant 0 : i32
    %c0_i32_1 = arith.constant 0 : i32
    return %c0_i32, %c0_i32_0 : i32, i32
  }
  func.func @transform_2(%arg0: i32) -> (i32, i32) {
    %c0_i32 = arith.constant 0 : i32
    %c0_i32_0 = arith.constant 0 : i32
    return %arg0, %c0_i32 : i32, i32
  }
}

</mosaic_0001>

<bundles_post_ra>
// kernel: upsample_nearest_2x.1
= control target key start
LH: loop header
LB: loop body
LE: loop exit
PB: predicated region body
PF: predicated region fallthrough
CT: control target
= control target key end

     0   :  { %vm23_vm0 = vcmask 261120   ;;  %s1309_s1 = inlined_call_operand.vmem [shape: f32[32,128], index: 1, kind: input, shape index: {}]   ;;  %s1310_s0 = inlined_call_operand.vmem [shape: f32[64,32], index: 0, kind: input, shape index: {}]   ;;  %s1311_s2 = inlined_call_operand.vmem [shape: f32[64,128], index: 2, kind: output, shape index: {}]  }
   0x1   :  { %v22_v0 = vld [vmem:[%s1309_s1 + $0x18] sm:$0xff]  ;;  %v21_v1 = vld [vmem:[%s1309_s1 + $0x10] sm:$0xff]  ;;  %v20_v2 = vld [vmem:[%s1309_s1 + $0x8] sm:$0xff] }
   0x2   :  { %v1062_v3 = vand.u32 4294901760, %v22_v0  ;;  %v1064_v4 = vand.u32 4294901760, %v21_v1  ;;  %v1066_v5 = vand.u32 4294901760, %v20_v2  ;;  %v19_v6 = vld [vmem:[%s1309_s1] sm:$0xff]  ;;  %v12_v8 = vld [vmem:[%s1310_s0 + $0x8] sm:$0xff]  ;;  %v13_v12 = vld [vmem:[%s1310_s0 + $0x10] sm:$0xff] }
   0x3   :  { %v11_v7 = vld [vmem:[%s1310_s0] sm:$0xff]  ;;  %v1077_v9 = vand.u32 4294901760, %v19_v6  ;;  %v28_v11 = vsel %vm23_vm0, %v12_v8, 0  ;;  %v14_v13 = vld [vmem:[%s1310_s0 + $0x18] sm:$0xff]  ;;  %v31_v19 = vsel %vm23_vm0, %v13_v12, 0  ;;  %v16_v39 = vld [vmem:[%s1310_s0 + $0x28] sm:$0xff] }
   0x4   :  { %v25_v10 = vsel %vm23_vm0, %v11_v7, 0  ;;  %918 = vmatprep.subr.mxu0 %v1062_v3  ;;  %v1089_v14 = vsub.f32 %v22_v0, %v1062_v3  ;;  %v1093_v16 = vand.u32 4294901760, %v28_v11  ;;  %v1096_v17 = vsub.f32 %v21_v1, %v1064_v4  ;;  %v15_v38 = vld [vmem:[%s1310_s0 + $0x20] sm:$0xff]  ;;  %v17_v47 = vld [vmem:[%s1310_s0 + $0x30] sm:$0xff]  ;;  %v18_v48 = vld [vmem:[%s1310_s0 + $0x38] sm:$0xff] }
   0x5   :  { %v1091_v15 = vand.u32 4294901760, %v25_v10  ;;  %919 = vmatpush3.msra.mxu0 %v1062_v3  ;;  %v1100_v18 = vsub.f32 %v20_v2, %v1066_v5  ;;  %v34_v20 = vsel %vm23_vm0, %v14_v13, 0  ;;  %v1105_v21 = vsub.f32 %v19_v6, %v1077_v9 }
   0x6   :  { %920 = vmatprep.subr.mxu0 %v1064_v4  ;;  %v1109_v22 = vand.u32 4294901760, %v1089_v14  ;;  %v1115_v24 = vsub.f32 %v28_v11, %v1093_v16  ;;  %v1118_v25 = vand.u32 4294901760, %v1096_v17  ;;  %v1125_v27 = vand.u32 4294901760, %v31_v19 }
   0x7   :  { %v1112_v23 = vsub.f32 %v25_v10, %v1091_v15  ;;  %946 = vmatprep.mubr.f32.mxu1 %v1091_v15  ;;  %921 = vmatpush3.msra.mxu0 %v1064_v4  ;;  %v1123_v26 = vand.u32 4294901760, %v1100_v18  ;;  %v1127_v28 = vand.u32 4294901760, %v34_v20  ;;  %v1130_v29 = vand.u32 4294901760, %v1105_v21 }
   0x8   :  { %922 = vmatprep.subr.mxu0 %v1066_v5  ;;  %v225_v30 = vsub.f32 %v1089_v14, %v1109_v22  ;;  %v129_v32 = vand.u32 4294901760, %v1115_v24  ;;  %v232_v33 = vsub.f32 %v1096_v17, %v1118_v25  ;;  %v1143_v35 = vsub.f32 %v31_v19, %v1125_v27 }
   0x9   :  { %v119_v31 = vand.u32 4294901760, %v1112_v23  ;;  %923 = vmatpush3.msra.mxu0 %v1066_v5  ;;  %v239_v34 = vsub.f32 %v1100_v18, %v1123_v26  ;;  %v1146_v36 = vsub.f32 %v34_v20, %v1127_v28  ;;  %v246_v37 = vsub.f32 %v1105_v21, %v1130_v29 }
   0xa   :  { %924 = vmatprep.subr.mxu0 %v1077_v9  ;;  %v226_v40 = vand.u32 4294901760, %v225_v30  ;;  %v130_v42 = vsub.f32 %v1115_v24, %v129_v32  ;;  %v233_v43 = vand.u32 4294901760, %v232_v33  ;;  %v139_v45 = vand.u32 4294901760, %v1143_v35 }
   0xb   :  { %v120_v41 = vsub.f32 %v1112_v23, %v119_v31  ;;  %925 = vmatpush3.msra.mxu0 %v1077_v9  ;;  %v240_v44 = vand.u32 4294901760, %v239_v34  ;;  %v149_v46 = vand.u32 4294901760, %v1146_v36  ;;  %v37_v51 = vsel %vm23_vm0, %v15_v38, 0 }
   0xc   :  { %938 = vmatprep.subr.mxu1 %v226_v40  ;;  %v131_v50 = vand.u32 4294901760, %v130_v42  ;;  %958 = vmatprep.subr.mxu0 %v1089_v14  ;;  %v40_v52 = vsel %vm23_vm0, %v16_v39, 0  ;;  %v140_v53 = vsub.f32 %v1143_v35, %v139_v45  ;;  %v1181_v55 = vand.u32 4294901760, %v37_v51 }
   0xd   :  { %v121_v49 = vand.u32 4294901760, %v120_v41  ;;  %939 = vmatpush3.msra.mxu1 %v226_v40  ;;  %v150_v54 = vsub.f32 %v1146_v36, %v149_v46  ;;  %v1183_v56 = vand.u32 4294901760, %v40_v52  ;;  %v247_v57 = vand.u32 4294901760, %v246_v37 }
   0xe   :  { %940 = vmatprep.subr.mxu1 %v233_v43  ;;  %v43_v58 = vsel %vm23_vm0, %v17_v47, 0  ;;  %v46_v59 = vsel %vm23_vm0, %v18_v48, 0  ;;  %v141_v60 = vand.u32 4294901760, %v140_v53  ;;  %v1188_v62 = vsub.f32 %v37_v51, %v1181_v55 }
   0xf   :  { %926 = vmatprep.mubr.f32.mxu0 %v121_v49  ;;  %941 = vmatpush3.msra.mxu1 %v233_v43  ;;  %v151_v61 = vand.u32 4294901760, %v150_v54  ;;  %v1191_v63 = vsub.f32 %v40_v52, %v1183_v56  ;;  %v1194_v0 = vand.u32 4294901760, %v43_v58  ;;  %v1196_v1 = vand.u32 4294901760, %v46_v59 }
  0x10   :  { %927 = vmatmul.mubr.f32.vlgmr.msra.gmra.mxu0 %v131_v50  ;;  %942 = vmatprep.subr.mxu1 %v240_v44  ;;  %v159_v2 = vand.u32 4294901760, %v1188_v62 }
  0x11   :  { %959 = vmatpush3.msra.mxu0 %v1089_v14  ;;  %929 = vmatprep.mubr.f32.mxu0 %v141_v60  ;;  %v169_v6 = vand.u32 4294901760, %v1191_v63  ;;  %v1202_v7 = vsub.f32 %v43_v58, %v1194_v0  ;;  %v1205_v8 = vsub.f32 %v46_v59, %v1196_v1 }
  0x12   :  { %943 = vmatpush3.msra.mxu1 %v240_v44  ;;  %960 = vmatprep.subr.mxu0 %v1096_v17  ;;  %v160_v10 = vsub.f32 %v1188_v62, %v159_v2 }
  0x13   :  { %944 = vmatprep.subr.mxu1 %v247_v57  ;;  %v170_v11 = vsub.f32 %v1191_v63, %v169_v6  ;;  %v179_v12 = vand.u32 4294901760, %v1202_v7  ;;  %v189_v13 = vand.u32 4294901760, %v1205_v8  ;;  %961 = vmatpush3.msra.mxu0 %v1096_v17 }
  0x14   :  { %930 = vmatmul.mubr.f32.gmra.mxu0 %v151_v61  ;;  %945 = vmatpush3.msra.mxu1 %v247_v57  ;;  %v161_v14 = vand.u32 4294901760, %v160_v10 }
  0x15   :  { %947 = vmatmul.mubr.f32.vlgmr.msra.gmra.mxu1 %v1093_v16  ;;  %978 = vmatprep.subr.mxu1 %v1062_v3  ;;  %v171_v19 = vand.u32 4294901760, %v170_v11  ;;  %v180_v20 = vsub.f32 %v1202_v7, %v179_v12  ;;  %v190_v30 = vsub.f32 %v1205_v8, %v189_v13 }
  0x16   :  { %979 = vmatpush3.msra.mxu1 %v1062_v3  ;;  %949 = vmatprep.mubr.f32.mxu1 %v1125_v27 }
  0x17   :  { %980 = vmatprep.subr.mxu1 %v1064_v4  ;;  %932 = vmatprep.mubr.f32.mxu0 %v161_v14  ;;  %v181_v33 = vand.u32 4294901760, %v180_v20  ;;  %v191_v34 = vand.u32 4294901760, %v190_v30 }
  0x18   :  { %981 = vmatpush3.msra.mxu1 %v1064_v4  ;;  %933 = vmatmul.mubr.f32.gmra.mxu0 %v171_v19 }
  0x19   :  { %950 = vmatmul.mubr.f32.gmra.mxu1 %v1127_v28  ;;  %962 = vmatprep.subr.mxu0 %v1100_v18 }
  0x1a   :  { %952 = vmatprep.mubr.f32.mxu1 %v1181_v55  ;;  %935 = vmatprep.mubr.f32.mxu0 %v181_v33 }
  0x1b   :  { %963 = vmatpush3.msra.mxu0 %v1100_v18  ;;  %982 = vmatprep.subr.mxu1 %v1066_v5 }
  0x1c   :  { %964 = vmatprep.subr.mxu0 %v1105_v21  ;;  %936 = vmatmul.mubr.f32.gmra.mxu0 %v191_v34 }
  0x1d   :  { %953 = vmatmul.mubr.f32.gmra.mxu1 %v1183_v56  ;;  %965 = vmatpush3.msra.mxu0 %v1105_v21 }
  0x1e   :  { %966 = vmatprep.mubr.f32.mxu0 %v1112_v23  ;;  %983 = vmatpush3.msra.mxu1 %v1066_v5 }
  0x1f   :  { %955 = vmatprep.mubr.f32.mxu1 %v1194_v0  ;;  %984 = vmatprep.subr.mxu1 %v1077_v9 }
  0x20   :  { %998 = vmatprep.subr.mxu0 %v1109_v22  ;;  %967 = vmatmul.mubr.f32.vlgmr.msra.gmra.mxu0 %v1115_v24 }
  0x21   :  { %956 = vmatmul.mubr.f32.gmra.mxu1 %v1196_v1  ;;  %969 = vmatprep.mubr.f32.mxu0 %v1143_v35 }
  0x22   :  { %985 = vmatpush3.msra.mxu1 %v1077_v9  ;;  %986 = vmatprep.mubr.f32.mxu1 %v119_v31 }
  0x23   :  { %999 = vmatpush3.msra.mxu0 %v1109_v22  ;;  %1018 = vmatprep.subr.mxu1 %v1062_v3 }
  0x24   :  { %1000 = vmatprep.subr.mxu0 %v1118_v25  ;;  %970 = vmatmul.mubr.f32.gmra.mxu0 %v1146_v36 }
  0x25   :  { %987 = vmatmul.mubr.f32.vlgmr.msra.gmra.mxu1 %v129_v32  ;;  %972 = vmatprep.mubr.f32.mxu0 %v1188_v62 }
  0x26   :  { %1019 = vmatpush3.msra.mxu1 %v1062_v3  ;;  %989 = vmatprep.mubr.f32.mxu1 %v139_v45 }
  0x27   :  { %1001 = vmatpush3.msra.mxu0 %v1118_v25  ;;  %1020 = vmatprep.subr.mxu1 %v1064_v4 }
  0x28   :  { %1002 = vmatprep.subr.mxu0 %v1123_v26  ;;  %973 = vmatmul.mubr.f32.gmra.mxu0 %v1191_v63 }
  0x29   :  { %990 = vmatmul.mubr.f32.gmra.mxu1 %v149_v46  ;;  %975 = vmatprep.mubr.f32.mxu0 %v1202_v7 }
  0x2a   :  { %1021 = vmatpush3.msra.mxu1 %v1064_v4  ;;  %992 = vmatprep.mubr.f32.mxu1 %v159_v2 }
  0x2b   :  { %1003 = vmatpush3.msra.mxu0 %v1123_v26  ;;  %1022 = vmatprep.subr.mxu1 %v1066_v5 }
  0x2c   :  { %1004 = vmatprep.subr.mxu0 %v1130_v29  ;;  %976 = vmatmul.mubr.f32.gmra.mxu0 %v1205_v8 }
  0x2d   :  { %993 = vmatmul.mubr.f32.gmra.mxu1 %v169_v6  ;;  %1005 = vmatpush3.msra.mxu0 %v1130_v29 }
  0x2e   :  { %1006 = vmatprep.mubr.f32.mxu0 %v1091_v15  ;;  %1023 = vmatpush3.msra.mxu1 %v1066_v5 }
  0x2f   :  { %995 = vmatprep.mubr.f32.mxu1 %v179_v12  ;;  %1024 = vmatprep.subr.mxu1 %v1077_v9 }
  0x30   :  { %1007 = vmatmul.mubr.f32.vlgmr.msra.gmra.mxu0 %v1093_v16  ;;  %1025 = vmatpush3.msra.mxu1 %v1077_v9 }
  0x31   :  { %996 = vmatmul.mubr.f32.gmra.mxu1 %v189_v13  ;;  %1009 = vmatprep.mubr.f32.mxu0 %v1125_v27 }
  0x32   :  { %1026 = vmatprep.mubr.f32.mxu1 %v1091_v15 }
  0x34   :  { %1010 = vmatmul.mubr.f32.gmra.mxu0 %v1127_v28 }
  0x35   :  { %1027 = vmatmul.mubr.f32.vlgmr.msra.gmra.mxu1 %v1093_v16  ;;  %1012 = vmatprep.mubr.f32.mxu0 %v1181_v55 }
  0x36   :  { %1029 = vmatprep.mubr.f32.mxu1 %v1125_v27 }
  0x38   :  { %1013 = vmatmul.mubr.f32.gmra.mxu0 %v1183_v56 }
  0x39   :  { %1030 = vmatmul.mubr.f32.gmra.mxu1 %v1127_v28  ;;  %1015 = vmatprep.mubr.f32.mxu0 %v1194_v0 }
  0x3a   :  { %1032 = vmatprep.mubr.f32.mxu1 %v1181_v55 }
  0x3c   :  { %1016 = vmatmul.mubr.f32.gmra.mxu0 %v1196_v1 }
  0x3d   :  { %1033 = vmatmul.mubr.f32.gmra.mxu1 %v1183_v56 }
  0x3e   :  { %1035 = vmatprep.mubr.f32.mxu1 %v1194_v0 }
  0x41   :  { %1036 = vmatmul.mubr.f32.gmra.mxu1 %v1196_v1 }
  0xd0   :  { %v928_v3 = vpop.f32.mrf.mxu0 }
  0xd2   :  { %v123_v4 = vpop.f32.mrf.mxu0 }
  0xd4   :  { %v931_v5 = vpop.f32.mrf.mxu0 }
  0xd5   :  { %v948_v9 = vpop.f32.mrf.mxu1 }
  0xd6   :  { %v143_v15 = vpop.f32.mrf.mxu0  ;;  %v291_v44 = vadd.f32 %v948_v9, %v928_v3 }
  0xd7   :  { %v284_v16 = vpop.f32.mrf.mxu1 }
  0xd8   :  { %v934_v17 = vpop.f32.mrf.mxu0  ;;  %v285_v47 = vadd.f32 %v284_v16, %v123_v4 }
  0xd9   :  { %v951_v18 = vpop.f32.mrf.mxu1 }
  0xda   :  { %v163_v21 = vpop.f32.mrf.mxu0  ;;  %v303_v51 = vadd.f32 %v951_v18, %v931_v5 }
  0xdb   :  { %v296_v22 = vpop.f32.mrf.mxu1 }
  0xdc   :  { %v937_v23 = vpop.f32.mrf.mxu0  ;;  %v297_v56 = vadd.f32 %v296_v22, %v143_v15 }
  0xdd   :  { %v954_v24 = vpop.f32.mrf.mxu1 }
  0xde   :  { %v183_v25 = vpop.f32.mrf.mxu0  ;;  %v315_v60 = vadd.f32 %v954_v24, %v934_v17 }
  0xdf   :  { %v308_v26 = vpop.f32.mrf.mxu1 }
  0xe0   :  { %v968_v27 = vpop.f32.mrf.mxu0  ;;  %v309_v6 = vadd.f32 %v308_v26, %v163_v21 }
  0xe1   :  { %v957_v28 = vpop.f32.mrf.mxu1  ;;  %v414_v48 = vadd.f32 %v968_v27, %v291_v44 }
  0xe2   :  { %v406_v29 = vpop.f32.mrf.mxu0  ;;  %v327_v14 = vadd.f32 %v957_v28, %v937_v23 }
  0xe3   :  { %v320_v31 = vpop.f32.mrf.mxu1  ;;  %v407_v52 = vadd.f32 %v406_v29, %v285_v47 }
  0xe4   :  { %v971_v32 = vpop.f32.mrf.mxu0  ;;  %v321_v4 = vadd.f32 %v320_v31, %v183_v25 }
  0xe5   :  { %v988_v35 = vpop.f32.mrf.mxu1  ;;  %v428_v57 = vadd.f32 %v971_v32, %v303_v51 }
  0xe6   :  { %v420_v36 = vpop.f32.mrf.mxu0  ;;  %v541_v53 = vadd.f32 %v988_v35, %v414_v48 }
  0xe7   :  { %v532_v37 = vpop.f32.mrf.mxu1  ;;  %v421_v63 = vadd.f32 %v420_v36, %v297_v56 }
  0xe8   :  { %v974_v38 = vpop.f32.mrf.mxu0  ;;  %v533_v58 = vadd.f32 %v532_v37, %v407_v52 }
  0xe9   :  { %v991_v39 = vpop.f32.mrf.mxu1  ;;  %v442_v10 = vadd.f32 %v974_v38, %v315_v60 }
  0xea   :  { %v434_v40 = vpop.f32.mrf.mxu0  ;;  %v557_v0 = vadd.f32 %v991_v39, %v428_v57 }
  0xeb   :  { %v548_v41 = vpop.f32.mrf.mxu1  ;;  %v435_v30 = vadd.f32 %v434_v40, %v309_v6 }
  0xec   :  { %v977_v42 = vpop.f32.mrf.mxu0  ;;  %v549_v11 = vadd.f32 %v548_v41, %v421_v63 }
  0xed   :  { %v994_v43 = vpop.f32.mrf.mxu1  ;;  %v456_v15 = vadd.f32 %v977_v42, %v327_v14 }
  0xee   :  { %v448_v45 = vpop.f32.mrf.mxu0  ;;  %v573_v33 = vadd.f32 %v994_v43, %v442_v10 }
  0xef   :  { %v564_v46 = vpop.f32.mrf.mxu1  ;;  %v449_v23 = vadd.f32 %v448_v45, %v321_v4 }
  0xf0   :  { %v1008_v49 = vpop.f32.mrf.mxu0  ;;  %v565_v16 = vadd.f32 %v564_v46, %v435_v30 }
  0xf1   :  { %v997_v50 = vpop.f32.mrf.mxu1  ;;  %v678_v59 = vadd.f32 %v1008_v49, %v541_v53 }
  0xf2   :  { %v671_v54 = vpop.f32.mrf.mxu0  ;;  %v589_v24 = vadd.f32 %v997_v50, %v456_v15 }
  0xf3   :  { %v580_v55 = vpop.f32.mrf.mxu1  ;;  %v672_v1 = vadd.f32 %v671_v54, %v533_v58 }
  0xf4   :  { %v1011_v61 = vpop.f32.mrf.mxu0  ;;  %v581_v29 = vadd.f32 %v580_v55, %v449_v23 }
  0xf5   :  { %v1028_v62 = vpop.f32.mrf.mxu1  ;;  %v690_v12 = vadd.f32 %v1011_v61, %v557_v0 }
  0xf6   :  { %v795_v2 = vadd.f32 %v1028_v62, %v678_v59  ;;  %v683_v7 = vpop.f32.mrf.mxu0 }
  0xf7   :  { %v788_v8 = vpop.f32.mrf.mxu1  ;;  %v684_v34 = vadd.f32 %v683_v7, %v549_v11 }
  0xf8   :  { %835 = vst [vmem:[%s1311_s2 + $0x8] sm:$0xff] %v795_v2  ;;  %v789_v13 = vadd.f32 %v788_v8, %v672_v1  ;;  %v1014_v19 = vpop.f32.mrf.mxu0 }
  0xf9   :  { %v1031_v20 = vpop.f32.mrf.mxu1  ;;  %v702_v17 = vadd.f32 %v1014_v19, %v573_v33 }
  0xfa   :  { %834 = vst [vmem:[%s1311_s2] sm:$0xff] %v789_v13  ;;  %v807_v3 = vadd.f32 %v1031_v20, %v690_v12  ;;  %v695_v5 = vpop.f32.mrf.mxu0 }
  0xfb   :  { %v800_v9 = vpop.f32.mrf.mxu1  ;;  %v696_v26 = vadd.f32 %v695_v5, %v565_v16 }
  0xfc   :  { %837 = vst [vmem:[%s1311_s2 + $0x18] sm:$0xff] %v807_v3  ;;  %v801_v18 = vadd.f32 %v800_v9, %v684_v34  ;;  %v1017_v21 = vpop.f32.mrf.mxu0 }
  0xfd   :  { %v1034_v22 = vpop.f32.mrf.mxu1  ;;  %v714_v31 = vadd.f32 %v1017_v21, %v589_v24 }
  0xfe   :  { %836 = vst [vmem:[%s1311_s2 + $0x10] sm:$0xff] %v801_v18  ;;  %v819_v25 = vadd.f32 %v1034_v22, %v702_v17  ;;  %v707_v27 = vpop.f32.mrf.mxu0 }
  0xff   :  { %v812_v28 = vpop.f32.mrf.mxu1  ;;  %v708_v36 = vadd.f32 %v707_v27, %v581_v29 }
 0x100   :  { %839 = vst [vmem:[%s1311_s2 + $0x28] sm:$0xff] %v819_v25  ;;  %v813_v32 = vadd.f32 %v812_v28, %v696_v26 }
 0x101   :  { %v1037_v35 = vpop.f32.mrf.mxu1 }
 0x102   :  { %838 = vst [vmem:[%s1311_s2 + $0x20] sm:$0xff] %v813_v32  ;;  %v831_v37 = vadd.f32 %v1037_v35, %v714_v31 }
 0x103   :  { %v824_v38 = vpop.f32.mrf.mxu1 }
 0x104   :  { %841 = vst [vmem:[%s1311_s2 + $0x38] sm:$0xff] %v831_v37  ;;  %v825_v39 = vadd.f32 %v824_v38, %v708_v36 }
 0x106   :  { %840 = vst [vmem:[%s1311_s2 + $0x30] sm:$0xff] %v825_v39 }

</bundles_post_ra>
